<compile_context>
chip_gen: v6e
topology: v6e:2x2x1
jax: 0.10.0
libtpu: 0.0.40
codegen_flags: <defaults>
</compile_context>

<pallas_src>
import functools

import jax
import jax.numpy as jnp
from jax.experimental import pallas as pl
from jax.experimental.pallas import tpu as pltpu


# Row/token tile size.  Sized so double-buffered activation tiles plus the full
# weight block stay well under v7x's 64 MiB physical VMEM (worst case at ViT-L
# sizes is ~15 MiB).  vmem_limit_bytes raises v5e's 16 MiB default scoped limit
# so these tiles are accepted there as well.
_ROW_TILE = 512
_VMEM_LIMIT = 48 * 1024 * 1024


def _row_tile(m, tile=_ROW_TILE):
    # Full dim if it fits (always a legal block); otherwise a multiple-of-8/16
    # tile, with Pallas masking the partial trailing block.
    return m if m <= tile else tile


def _compiler_params(dimension_semantics):
    return pltpu.CompilerParams(
        dimension_semantics=dimension_semantics,
        vmem_limit_bytes=_VMEM_LIMIT,
    )


# ----------------------------------------------------------------------------
# Kernel 1: plain linear  y = x @ w + b   (decoder_embed)
# ----------------------------------------------------------------------------
def _linear_kernel(x_ref, w_ref, b_ref, o_ref):
    x = x_ref[...].astype(jnp.bfloat16)
    w = w_ref[...].astype(jnp.bfloat16)
    y = jnp.dot(x, w, preferred_element_type=jnp.float32) + b_ref[...]
    o_ref[...] = y.astype(o_ref.dtype)


def pallas_linear(x2d, w, b, out_dtype=jnp.bfloat16):
    """Row-tiled linear: grid over row blocks, full weight per block."""
    M, Din = x2d.shape
    Dout = w.shape[1]
    tm = _row_tile(M)
    return pl.pallas_call(
        _linear_kernel,
        out_shape=jax.ShapeDtypeStruct((M, Dout), out_dtype),
        grid=(pl.cdiv(M, tm),),
        in_specs=[
            pl.BlockSpec((tm, Din), lambda i: (i, 0)),
            pl.BlockSpec((Din, Dout), lambda i: (0, 0)),
            pl.BlockSpec((1, Dout), lambda i: (0, 0)),
        ],
        out_specs=pl.BlockSpec((tm, Dout), lambda i: (i, 0)),
        compiler_params=_compiler_params(("parallel",)),
    )(x2d, w, b.reshape(1, Dout))


# ----------------------------------------------------------------------------
# Kernel 2: fused (x + pos) -> LayerNorm -> linear   (decoder_norm + decoder_qk)
# ----------------------------------------------------------------------------
def _pos_ln_linear_kernel(x_ref, pos_ref, g_ref, beta_ref, w_ref, b_ref, o_ref,
                          *, eps):
    # x: (1, tn, D), pos: (1, tn, D); LN statistics kept in f32 (torch LN).
    x = x_ref[0].astype(jnp.float32) + pos_ref[0].astype(jnp.float32)
    mu = jnp.mean(x, axis=-1, keepdims=True)
    var = jnp.mean(jnp.square(x - mu), axis=-1, keepdims=True)   # biased var
    xn = (x - mu) * jax.lax.rsqrt(var + eps)
    xn = xn * g_ref[...] + beta_ref[...]
    y = jnp.dot(xn.astype(jnp.bfloat16), w_ref[...].astype(jnp.bfloat16),
                preferred_element_type=jnp.float32) + b_ref[...]
    o_ref[0] = y.astype(o_ref.dtype)


def pallas_pos_layernorm_linear(x, pos, gamma, beta, w, b, eps=1e-5,
                                out_dtype=jnp.bfloat16):
    """Fused pos-embed add + LayerNorm + projection, tiled over (batch, tokens)."""
    B, N, D = x.shape
    Dout = w.shape[1]
    tn = _row_tile(N)
    kernel = functools.partial(_pos_ln_linear_kernel, eps=eps)
    return pl.pallas_call(
        kernel,
        out_shape=jax.ShapeDtypeStruct((B, N, Dout), out_dtype),
        grid=(B, pl.cdiv(N, tn)),
        in_specs=[
            pl.BlockSpec((1, tn, D), lambda bi, j: (bi, j, 0)),
            pl.BlockSpec((1, tn, D), lambda bi, j: (0, j, 0)),
            pl.BlockSpec((1, D), lambda bi, j: (0, 0)),
            pl.BlockSpec((1, D), lambda bi, j: (0, 0)),
            pl.BlockSpec((D, Dout), lambda bi, j: (0, 0)),
            pl.BlockSpec((1, Dout), lambda bi, j: (0, 0)),
        ],
        out_specs=pl.BlockSpec((1, tn, Dout), lambda bi, j: (bi, j, 0)),
        compiler_params=_compiler_params(("parallel", "parallel")),
    )(x, pos, gamma.reshape(1, D), beta.reshape(1, D), w, b.reshape(1, Dout))


# ----------------------------------------------------------------------------
# Kernel 3: q @ k^T attention, emitting the final (B, M, H*(N-1)) layout
# ----------------------------------------------------------------------------
def _attn_kernel(q_ref, kt_ref, o_ref, *, scale):
    # q: (1, H, M, hd), kt: (1, H, hd, Nk) -> o: (1, M, H*Nk)
    # Scale folded into q (M*hd elems) instead of the (M, H*Nk) result.
    q = (q_ref[0].astype(jnp.float32) * scale).astype(jnp.bfloat16)   # (H, M, hd)
    kt = kt_ref[0].astype(jnp.bfloat16)                               # (H, hd, Nk)
    num_heads = q.shape[0]
    per_head = [
        jnp.dot(q[h], kt[h], preferred_element_type=jnp.float32)      # (M, Nk)
        for h in range(num_heads)
    ]
    # Concatenate heads along lanes -> one dense (M, H*Nk) store in the final
    # layout; the wrapper's reshape to (B, 1, M, H, Nk) is metadata-only.
    o_ref[0] = jnp.concatenate(per_head, axis=-1).astype(o_ref.dtype)


def pallas_qk_attention(q_bhmd, kt_bhdn, scale, out_dtype=jnp.float32):
    """out[b, m, h*Nk + n] = scale * sum_d q[b,h,m,d] * kt[b,h,d,n]."""
    B, H, M, hd = q_bhmd.shape
    Nk = kt_bhdn.shape[3]
    kernel = functools.partial(_attn_kernel, scale=scale)
    return pl.pallas_call(
        kernel,
        out_shape=jax.ShapeDtypeStruct((B, M, H * Nk), out_dtype),
        grid=(B,),
        in_specs=[
            pl.BlockSpec((1, H, M, hd), lambda bi: (bi, 0, 0, 0)),
            pl.BlockSpec((1, H, hd, Nk), lambda bi: (bi, 0, 0, 0)),
        ],
        out_specs=pl.BlockSpec((1, M, H * Nk), lambda bi: (bi, 0, 0)),
        compiler_params=_compiler_params(("parallel",)),
    )(q_bhmd, kt_bhdn)


# ----------------------------------------------------------------------------
# Parameter construction (deterministic, mirrors ViTDecoderAtt.__init__)
# ----------------------------------------------------------------------------
def init_params(key, embed_dim, pred_dim, pred_num_heads, decoder_embed_dim):
    k1, k2, k3 = jax.random.split(key, 3)

    def xavier(k, fan_in, fan_out):
        a = (6.0 / (fan_in + fan_out)) ** 0.5
        # stored as (in, out); equivalent to torch's (out, in) weight transposed
        return jax.random.uniform(k, (fan_in, fan_out), jnp.float32, -a, a)

    return {
        "embed_w": xavier(k1, embed_dim, decoder_embed_dim),
        "embed_b": jnp.zeros((decoder_embed_dim,), jnp.float32),
        "mask_token": 0.02 * jax.random.normal(k2, (1, 1, decoder_embed_dim), jnp.float32),
        "ln_gamma": jnp.ones((decoder_embed_dim,), jnp.float32),
        "ln_beta": jnp.zeros((decoder_embed_dim,), jnp.float32),
        "qk_w": xavier(k3, decoder_embed_dim, 2 * pred_dim),
        "qk_b": jnp.zeros((2 * pred_dim,), jnp.float32),
        "scale": pred_dim ** (-0.5),
        "pred_num_heads": pred_num_heads,
    }


# ----------------------------------------------------------------------------
# Forward pass (semantics match ViTDecoderAtt.forward)
# ----------------------------------------------------------------------------
def vit_decoder_att_forward(params, x, ids_restore, att_idx, decoder_pos_embed,
                            decoder_blocks=()):
    B, L, E = x.shape
    D = params["embed_w"].shape[1]
    H = params["pred_num_heads"]

    # x = decoder_embed(x)
    x = pallas_linear(x.reshape(B * L, E), params["embed_w"], params["embed_b"])
    x = x.reshape(B, L, D)

    # Append mask tokens and unshuffle via ids_restore (JAX gather glue).
    # TODO(synk): at large B*N this gather could be fused into the LN kernel
    # via PrefetchScalarGridSpec + pl.Element row indexing.
    n_full = ids_restore.shape[1]
    n_mask = n_full + 1 - L
    mask_tokens = jnp.broadcast_to(params["mask_token"].astype(x.dtype), (B, n_mask, D))
    x_ = jnp.concatenate([x[:, 1:, :], mask_tokens], axis=1)          # (B, n_full, D)
    x_ = jnp.take_along_axis(x_, ids_restore[:, :, None], axis=1)     # unshuffle
    x = jnp.concatenate([x[:, :1, :], x_], axis=1)                    # (B, N, D)

    # TODO(synk): decoder_blocks are external transformer blocks passed at call
    # time; applied here as plain JAX callables (empty in the demo).
    if decoder_blocks:
        x = (x + decoder_pos_embed).astype(x.dtype)
        for blk in decoder_blocks:
            x = blk(x)
        pos = jnp.zeros_like(decoder_pos_embed)   # pos already applied above
    else:
        pos = decoder_pos_embed                   # fused into the LN+QK kernel

    B_, N, C = x.shape

    # fused (+pos) + decoder_norm + decoder_qk projection
    qk = pallas_pos_layernorm_linear(
        x, pos, params["ln_gamma"], params["ln_beta"],
        params["qk_w"], params["qk_b"])                               # (B, N, 2*pred_dim)

    # torch: reshape(B, N, 2, 1, H, hd) -> [all-q | all-k] halves, head-major,
    # head-dim minor; identical split below.
    P2 = qk.shape[-1]
    hd = P2 // (2 * H)
    qk = qk.reshape(B_, N, 2, H, hd)
    q_heads = qk[:, :, 0]          # (B, N, H, hd)
    k_heads = qk[:, :, 1]          # (B, N, H, hd)

    # Select query tokens: cls token + att_idx-gathered patch tokens.
    att_sel = att_idx[:, 0, :]                                        # (B, K)
    sel = jnp.concatenate(
        [jnp.zeros((B_, 1), att_sel.dtype), att_sel + 1], axis=1)     # (B, M)
    q_sel = jnp.take_along_axis(q_heads, sel[:, :, None, None], axis=1)  # (B, M, H, hd)

    # Layout plumbing for the attention kernel: q -> (B, H, M, hd);
    # k with the cls column dropped up front -> (B, H, hd, N-1).
    q_bhmd = jnp.transpose(q_sel, (0, 2, 1, 3))
    kt_bhdn = jnp.transpose(k_heads[:, 1:], (0, 2, 3, 1))

    att = pallas_qk_attention(q_bhmd, kt_bhdn, params["scale"])       # (B, M, H*(N-1))
    M = q_bhmd.shape[2]
    Nk = kt_bhdn.shape[3]
    return att.reshape(B_, 1, M, H, Nk)   # metadata-only reshape to final layout


# ----------------------------------------------------------------------------
# Demo
# ----------------------------------------------------------------------------
if __name__ == "__main__":
    # small shapes consistent with the module
    B = 2            # batch
    embed_dim = 32   # encoder embedding dim
    decoder_embed_dim = 16
    pred_dim = embed_dim          # pred_dim=None -> embed_dim
    pred_num_heads = 4            # head dim = 32 / 4 = 8
    L = 5                         # visible tokens incl. cls
    n_full = 8                    # total patch tokens (ids_restore length)
    N = n_full + 1                # full sequence incl. cls
    K = 3                         # number of attended query patches

    key = jax.random.PRNGKey(0)
    kp, kx, kpos, kperm, kidx = jax.random.split(key, 5)

    params = init_params(kp, embed_dim, pred_dim, pred_num_heads, decoder_embed_dim)

    x = jax.random.normal(kx, (B, L, embed_dim), jnp.float32)
    decoder_pos_embed = jax.random.normal(kpos, (1, N, decoder_embed_dim), jnp.float32)
    ids_restore = jnp.stack(
        [jax.random.permutation(jax.random.fold_in(kperm, b), n_full) for b in range(B)]
    ).astype(jnp.int32)                                        # (B, n_full)
    att_idx = jax.random.randint(kidx, (B, 1, K), 0, n_full).astype(jnp.int32)

    att = vit_decoder_att_forward(
        params, x, ids_restore, att_idx, decoder_pos_embed, decoder_blocks=())
    att = jax.block_until_ready(att)

    expected_shape = (B, 1, K + 1, pred_num_heads, N - 1)
    assert att.shape == expected_shape, (att.shape, expected_shape)
    print("KERNEL_OK")
</pallas_src>

<mosaic_0001>
module attributes {stable_mosaic.version = 11 : i64} {
  func.func @_linear_kernel(%arg0: i32, %arg1: memref<10x32xf32, #tpu.memory_space<vmem>>, %arg2: memref<32x16xf32, #tpu.memory_space<vmem>>, %arg3: memref<1x16xf32, #tpu.memory_space<vmem>>, %arg4: memref<10x16xbf16, #tpu.memory_space<vmem>>) attributes {dimension_semantics = [#tpu.dimension_semantics<parallel>], iteration_bounds = array<i64: 1>, scalar_prefetch = 0 : i64, scratch_operands = 0 : i64, tpu.core_type = #tpu.core_type<tc>, window_params = [{transform_indices = @transform_0, window_bounds = array<i64: 10, 32>}, {pipeline_mode = #tpu.pipeline_mode<synchronous>, transform_indices = @transform_1, window_bounds = array<i64: 32, 16>}, {pipeline_mode = #tpu.pipeline_mode<synchronous>, transform_indices = @transform_2, window_bounds = array<i64: 1, 16>}, {transform_indices = @transform_3, window_bounds = array<i64: 10, 16>}]} {
    %c0 = arith.constant 0 : index
    %c0_0 = arith.constant 0 : index
    %0 = vector.load %arg1[%c0, %c0_0] : memref<10x32xf32, #tpu.memory_space<vmem>>, vector<10x32xf32>
    %1 = arith.truncf %0 : vector<10x32xf32> to vector<10x32xbf16>
    %c0_1 = arith.constant 0 : index
    %c0_2 = arith.constant 0 : index
    %2 = vector.load %arg2[%c0_1, %c0_2] : memref<32x16xf32, #tpu.memory_space<vmem>>, vector<32x16xf32>
    %3 = arith.truncf %2 : vector<32x16xf32> to vector<32x16xbf16>
    %cst = arith.constant dense<0.000000e+00> : vector<10x16xf32>
    %4 = tpu.matmul %1, %3, %cst {dimension_numbers = #tpu.dot_dimension_numbers<[1], [0], [0], [1], [0, 0, 1, 1], [], []>} : vector<10x32xbf16>, vector<32x16xbf16>, vector<10x16xf32> -> vector<10x16xf32>
    %c0_3 = arith.constant 0 : index
    %c0_4 = arith.constant 0 : index
    %5 = vector.load %arg3[%c0_3, %c0_4] : memref<1x16xf32, #tpu.memory_space<vmem>>, vector<1x16xf32>
    %6 = vector.broadcast %5 : vector<1x16xf32> to vector<10x16xf32>
    %7 = arith.addf %4, %6 : vector<10x16xf32>
    %8 = arith.truncf %7 : vector<10x16xf32> to vector<10x16xbf16>
    %c0_5 = arith.constant 0 : index
    %c0_6 = arith.constant 0 : index
    %9 = vector.load %arg4[%c0_5, %c0_6] : memref<10x16xbf16, #tpu.memory_space<vmem>>, vector<10x16xbf16>
    tpu.vector_store %arg4[%c0_5, %c0_6], %8 {strides = array<i32>} : memref<10x16xbf16, #tpu.memory_space<vmem>>, vector<10x16xbf16>,
    return
  }
  func.func @transform_0(%arg0: i32) -> (i32, i32) {
    %c0_i32 = arith.constant 0 : i32
    %c0_i32_0 = arith.constant 0 : i32
    return %arg0, %c0_i32 : i32, i32
  }
  func.func @transform_1(%arg0: i32) -> (i32, i32) {
    %c0_i32 = arith.constant 0 : i32
    %c0_i32_0 = arith.constant 0 : i32
    %c0_i32_1 = arith.constant 0 : i32
    return %c0_i32, %c0_i32_0 : i32, i32
  }
  func.func @transform_2(%arg0: i32) -> (i32, i32) {
    %c0_i32 = arith.constant 0 : i32
    %c0_i32_0 = arith.constant 0 : i32
    %c0_i32_1 = arith.constant 0 : i32
    return %c0_i32, %c0_i32_0 : i32, i32
  }
  func.func @transform_3(%arg0: i32) -> (i32, i32) {
    %c0_i32 = arith.constant 0 : i32
    %c0_i32_0 = arith.constant 0 : i32
    return %arg0, %c0_i32 : i32, i32
  }
}

</mosaic_0001>

<bundles_post_ra>
// kernel: tpu_custom_call.1
= control target key start
LH: loop header
LB: loop body
LE: loop exit
PB: predicated region body
PF: predicated region fallthrough
CT: control target
= control target key end

     0   :  { %v149_v3 = vmov 0.0   ;;  %vm150_vm0 = vmmov 0   ;;  %s198_s0 = inlined_call_operand.vmem [shape: f32[10,32], index: 0, kind: input, shape index: {}]   ;;  %s199_s1 = inlined_call_operand.vmem [shape: f32[32,16], index: 1, kind: input, shape index: {}]   ;;  %s200_s2 = inlined_call_operand.vmem [shape: f32[1,16], index: 2, kind: input, shape index: {}]   ;;  %s201_s3 = inlined_call_operand.hbm [shape: bf16[10,16], index: 3, kind: output, shape index: {}]  }
   0x1   :  { %v21_v0 = vld [vmem:[%s199_s1 + $0x10] sm:$0xff]  ;;  %v22_v1 = vld [vmem:[%s199_s1 + $0x18] sm:$0xff]  ;;  %v19_v2 = vld [vmem:[%s199_s1] sm:$0xff]  ;;  %114 = vmatprep.subr.bf16.mxu0 %v149_v3  ;;  %118 = vmatprep.mubr.msk.bf16.mxu0 %vm150_vm0, %v149_v3 }
   0x2   :  { %v24_v4 = vpack.c.bf16 %v22_v1, %v21_v0  ;;  %v20_v5 = vld [vmem:[%s199_s1 + $0x8] sm:$0xff] }
   0x3   :  { %8 = vsyncpa [#allocation3], 0  ;;  %v23_v6 = vpack.c.bf16 %v20_v5, %v19_v2  ;;  %v16_v7 = vld [vmem:[%s198_s0] sm:$0xff]  ;;  %v17_v8 = vld [vmem:[%s198_s0 + $0x8] sm:$0x3]  ;;  %vm32_vm1 = vcmask 261120  }
   0x4   :  { %115 = vmatpush3.bf16.msra.mxu0 %v24_v4  ;;  %v18_v9 = vpack.c.bf16 %v17_v8, %v16_v7  ;;  %v105_v10 = vld [vmem:[%s200_s2] ss:$0 sm:$0xff]  ;;  %vm85_vm2 = vcmask 125952   ;;  %s151_s25 = smov [#allocation2]   ;;  %vm87_vm3 = vcmask 122880  }
   0x5   :  { %116 = vmatprep.subr.bf16.mxu0 %v149_v3  ;;  %s94_s26 = sshll.u32 %s151_s25, 4  ;;  %s95_s26 = int_to_ptr.vmem [resolvable:$true] %s94_s26 }
   0x6   :  { %s127_s0 = scalar_lea.vmem %s95_s26, 128  ;;  %p132_p1 = scmp.lt.s32.totalorder %s95_s26, %s95_s26 }
   0x7   :  { %p128_p0 = scmp.ne.s32.totalorder %s95_s26, %s127_s0  ;;  %p133_p2 = scmp.lt.s32.totalorder %s127_s0, %s127_s0 }
   0x8   :  { %117 = vmatpush3.bf16.msra.mxu0 %v23_v6 }
   0x9   :  { %p134_p3 = por %p133_p2, %p132_p1 }
   0xb   :  { %119 = vmatmul.mubr.msk.bf16.vlgmr.msra.gmra.mxu0 %vm32_vm1, %v18_v9  ;;  %p135_p4 = pnand %p134_p3, %p128_p0 }
  0xcb   :  { %v70_v11 = vpop.f32.mrf.mxu0 }
  0xcc   :  { %v71_v12 = vadd.f32 %v105_v10, %v70_v11 }
  0xcd   :  { %v120_v13 = vpop.f32.mrf.mxu0 }
  0xce   :  { %v109_v14 = vpack.c.bf16 %v71_v12, %v71_v12 }
  0xcf   :  { %v73_v15 = vpop.f32.mrf.mxu0 }
  0xd0   :  { %86 = vst.msk [vmem:[#allocation2] sm:$0xf] %vm85_vm2, %v109_v14  ;;  %v74_v16 = vadd.f32 %v105_v10, %v73_v15 }
  0xd1   :  { %v121_v17 = vpop.f32.mrf.mxu0 }
  0xd2   :  { %v110_v18 = vpack.c.bf16 %v74_v16, %v74_v16 }
  0xd4   :  { %88 = vst.msk [vmem:[#allocation2 + $0x4] sm:$0x1] %vm87_vm3, %v110_v18 }
  0xd5   :  { %138 = shalt.err (!%p135_p4)
}
  0xd6   :  { %s152_s2 = smov 64   ;;  %s153_s27 = smov 4  }
  0xd7   :  { %100 = dma.vmem_to_hbm [thread:$0]  %s95_s26, 128, %s201_s3, [#allocation3], %s152_s2, %s152_s2, %s153_s27  }
  0xd8   :  { %147 = dma.done.wait [#allocation3], 128  }
  0xd9   :  { %148 = vsyncadd [#allocation3], 4294967168 }
  0xda   :  { %104 = vsyncpa [#allocation3], 1 }

</bundles_post_ra>
